<compile_context>
chip_gen: v7x
topology: tpu7x:2x2x1
jax: 0.10.0
libtpu: 0.0.40
codegen_flags: <defaults>
</compile_context>

<pallas_src>
import jax
import jax.numpy as jnp
from jax.experimental import pallas as pl
from jax.experimental.pallas import tpu as pltpu

IN_FEATURES = 32   # train_x.shape[1] — synthetic choice
HIDDEN = 100
OUT = 3
BATCH = 8
PAD = 128          # lane-aligned width used for every layer inside the kernel


def mlp_kernel(x_ref, w_ref, b_ref, o_ref):
    # x_ref: (TILE_M, PAD)  zero-padded inputs
    # w_ref: (4, PAD, PAD)  zero-padded weights, pre-transposed to (in, out)
    # b_ref: (4, PAD)       zero-padded biases
    # o_ref: (TILE_M, PAD)  lane-dense output (cols OUT..PAD-1 are exactly 0)
    b = b_ref[...]

    h = x_ref[...]
    # Layer 1: Linear + ReLU
    h = jnp.maximum(
        jnp.dot(h, w_ref[0], preferred_element_type=jnp.float32) + b[0:1, :], 0.0)
    # Layer 2: Linear + ReLU
    h = jnp.maximum(
        jnp.dot(h, w_ref[1], preferred_element_type=jnp.float32) + b[1:2, :], 0.0)
    # Layer 3: Linear + ReLU
    h = jnp.maximum(
        jnp.dot(h, w_ref[2], preferred_element_type=jnp.float32) + b[2:3, :], 0.0)
    # Layer 4: Linear (no activation)
    y = jnp.dot(h, w_ref[3], preferred_element_type=jnp.float32) + b[3:4, :]
    o_ref[...] = y.astype(o_ref.dtype)


def _pad2(a, rows, cols):
    r, c = a.shape
    return jnp.pad(a, ((0, rows - r), (0, cols - c)))


def pack_params(params):
    """Pack the 8 per-layer tensors into one weight slab and one bias slab."""
    (w1, b1, w2, b2, w3, b3, w4, b4) = params
    w_slab = jnp.stack([
        _pad2(w1, PAD, PAD),
        _pad2(w2, PAD, PAD),
        _pad2(w3, PAD, PAD),
        _pad2(w4, PAD, PAD),
    ])                                                     # (4, PAD, PAD) f32
    b_slab = jnp.stack([
        jnp.pad(b1.reshape(-1), (0, PAD - b1.size)),
        jnp.pad(b2.reshape(-1), (0, PAD - b2.size)),
        jnp.pad(b3.reshape(-1), (0, PAD - b3.size)),
        jnp.pad(b4.reshape(-1), (0, PAD - b4.size)),
    ])                                                     # (4, PAD) f32
    return w_slab, b_slab


def mlp_forward(x, w_slab, b_slab):
    B, F = x.shape
    # Batch tile: multiple of 8 sublanes; cap at 128 rows per grid step.
    tile_m = 128 if B >= 128 else max(8, -(-B // 8) * 8)
    Bp = -(-B // tile_m) * tile_m
    x_p = jnp.pad(x, ((0, Bp - B), (0, PAD - F)))          # lane-align inputs

    out_p = pl.pallas_call(
        mlp_kernel,
        out_shape=jax.ShapeDtypeStruct((Bp, PAD), jnp.float32),
        grid=(Bp // tile_m,),
        in_specs=[
            pl.BlockSpec((tile_m, PAD), lambda i: (i, 0)),        # x tiles
            pl.BlockSpec((4, PAD, PAD), lambda i: (0, 0, 0)),     # weights (resident)
            pl.BlockSpec((4, PAD), lambda i: (0, 0)),             # biases  (resident)
        ],
        out_specs=pl.BlockSpec((tile_m, PAD), lambda i: (i, 0)),
        compiler_params=pltpu.CompilerParams(
            dimension_semantics=("parallel",)),
    )(x_p, w_slab, b_slab)
    return out_p[:B, :OUT]


def init_params(key):
    # PyTorch nn.Linear default: U(-1/sqrt(fan_in), 1/sqrt(fan_in)).
    # Weights stored as (in, out) = W^T for direct x @ W.
    def linear(key, fan_in, fan_out):
        kw, kb = jax.random.split(key)
        bound = 1.0 / jnp.sqrt(fan_in)
        w = jax.random.uniform(kw, (fan_in, fan_out), jnp.float32, -bound, bound)
        b = jax.random.uniform(kb, (1, fan_out), jnp.float32, -bound, bound)
        return w, b

    k1, k2, k3, k4 = jax.random.split(key, 4)
    w1, b1 = linear(k1, IN_FEATURES, HIDDEN)
    w2, b2 = linear(k2, HIDDEN, HIDDEN)
    w3, b3 = linear(k3, HIDDEN, HIDDEN)
    w4, b4 = linear(k4, HIDDEN, OUT)
    return (w1, b1, w2, b2, w3, b3, w4, b4)


def reference_forward(x, params):
    (w1, b1, w2, b2, w3, b3, w4, b4) = params
    h = jnp.maximum(x @ w1 + b1, 0.0)
    h = jnp.maximum(h @ w2 + b2, 0.0)
    h = jnp.maximum(h @ w3 + b3, 0.0)
    return h @ w4 + b4


if __name__ == "__main__":
    key = jax.random.PRNGKey(0)
    kx, kp = jax.random.split(key)
    x = jax.random.normal(kx, (BATCH, IN_FEATURES), jnp.float32)
    params = init_params(kp)
    w_slab, b_slab = pack_params(params)

    out = mlp_forward(x, w_slab, b_slab)
    out = jax.block_until_ready(out)

    ref = reference_forward(x, params)
    assert out.shape == (BATCH, OUT)
    assert jnp.allclose(out, ref, atol=1e-4, rtol=1e-4)

    print("KERNEL_OK")
</pallas_src>

<mosaic_0001>
module attributes {stable_mosaic.version = 11 : i64} {
  func.func @mlp_kernel(%arg0: i32, %arg1: memref<8x128xf32, #tpu.memory_space<vmem>>, %arg2: memref<4x128x128xf32, #tpu.memory_space<vmem>>, %arg3: memref<4x128xf32, #tpu.memory_space<vmem>>, %arg4: memref<8x128xf32, #tpu.memory_space<vmem>>) attributes {dimension_semantics = [#tpu.dimension_semantics<parallel>], iteration_bounds = array<i64: 1>, scalar_prefetch = 0 : i64, scratch_operands = 0 : i64, tpu.core_type = #tpu.core_type<tc>, window_params = [{transform_indices = @transform_0, window_bounds = array<i64: 8, 128>}, {pipeline_mode = #tpu.pipeline_mode<synchronous>, transform_indices = @transform_1, window_bounds = array<i64: 4, 128, 128>}, {pipeline_mode = #tpu.pipeline_mode<synchronous>, transform_indices = @transform_2, window_bounds = array<i64: 4, 128>}, {transform_indices = @transform_3, window_bounds = array<i64: 8, 128>}]} {
    %c0 = arith.constant 0 : index
    %c0_0 = arith.constant 0 : index
    %0 = vector.load %arg3[%c0, %c0_0] : memref<4x128xf32, #tpu.memory_space<vmem>>, vector<4x128xf32>
    %c0_1 = arith.constant 0 : index
    %c0_2 = arith.constant 0 : index
    %1 = vector.load %arg1[%c0_1, %c0_2] : memref<8x128xf32, #tpu.memory_space<vmem>>, vector<8x128xf32>
    %c0_3 = arith.constant 0 : index
    %c0_4 = arith.constant 0 : index
    %c0_5 = arith.constant 0 : index
    %2 = vector.load %arg2[%c0_3, %c0_4, %c0_5] : memref<4x128x128xf32, #tpu.memory_space<vmem>>, vector<1x128x128xf32>
    %3 = vector.shape_cast %2 : vector<1x128x128xf32> to vector<128x128xf32>
    %cst = arith.constant dense<0.000000e+00> : vector<8x128xf32>
    %4 = tpu.matmul %1, %3, %cst {dimension_numbers = #tpu.dot_dimension_numbers<[1], [0], [0], [1], [0, 0, 1, 1], [], []>} : vector<8x128xf32>, vector<128x128xf32>, vector<8x128xf32> -> vector<8x128xf32>
    %5 = vector.extract_strided_slice %0 {offsets = [0, 0], sizes = [1, 128], strides = [1, 1]} : vector<4x128xf32> to vector<1x128xf32>
    %6 = vector.broadcast %5 : vector<1x128xf32> to vector<8x128xf32>
    %7 = arith.addf %4, %6 : vector<8x128xf32>
    %cst_6 = arith.constant 0.000000e+00 : f32
    %8 = vector.broadcast %cst_6 : f32 to vector<8x128xf32>
    %9 = arith.maximumf %7, %8 : vector<8x128xf32>
    %c1 = arith.constant 1 : index
    %c0_7 = arith.constant 0 : index
    %c0_8 = arith.constant 0 : index
    %10 = vector.load %arg2[%c1, %c0_7, %c0_8] : memref<4x128x128xf32, #tpu.memory_space<vmem>>, vector<1x128x128xf32>
    %11 = vector.shape_cast %10 : vector<1x128x128xf32> to vector<128x128xf32>
    %cst_9 = arith.constant dense<0.000000e+00> : vector<8x128xf32>
    %12 = tpu.matmul %9, %11, %cst_9 {dimension_numbers = #tpu.dot_dimension_numbers<[1], [0], [0], [1], [0, 0, 1, 1], [], []>} : vector<8x128xf32>, vector<128x128xf32>, vector<8x128xf32> -> vector<8x128xf32>
    %13 = vector.extract_strided_slice %0 {offsets = [1, 0], sizes = [1, 128], strides = [1, 1]} : vector<4x128xf32> to vector<1x128xf32>
    %14 = vector.broadcast %13 : vector<1x128xf32> to vector<8x128xf32>
    %15 = arith.addf %12, %14 : vector<8x128xf32>
    %cst_10 = arith.constant 0.000000e+00 : f32
    %16 = vector.broadcast %cst_10 : f32 to vector<8x128xf32>
    %17 = arith.maximumf %15, %16 : vector<8x128xf32>
    %c2 = arith.constant 2 : index
    %c0_11 = arith.constant 0 : index
    %c0_12 = arith.constant 0 : index
    %18 = vector.load %arg2[%c2, %c0_11, %c0_12] : memref<4x128x128xf32, #tpu.memory_space<vmem>>, vector<1x128x128xf32>
    %19 = vector.shape_cast %18 : vector<1x128x128xf32> to vector<128x128xf32>
    %cst_13 = arith.constant dense<0.000000e+00> : vector<8x128xf32>
    %20 = tpu.matmul %17, %19, %cst_13 {dimension_numbers = #tpu.dot_dimension_numbers<[1], [0], [0], [1], [0, 0, 1, 1], [], []>} : vector<8x128xf32>, vector<128x128xf32>, vector<8x128xf32> -> vector<8x128xf32>
    %21 = vector.extract_strided_slice %0 {offsets = [2, 0], sizes = [1, 128], strides = [1, 1]} : vector<4x128xf32> to vector<1x128xf32>
    %22 = vector.broadcast %21 : vector<1x128xf32> to vector<8x128xf32>
    %23 = arith.addf %20, %22 : vector<8x128xf32>
    %cst_14 = arith.constant 0.000000e+00 : f32
    %24 = vector.broadcast %cst_14 : f32 to vector<8x128xf32>
    %25 = arith.maximumf %23, %24 : vector<8x128xf32>
    %c3 = arith.constant 3 : index
    %c0_15 = arith.constant 0 : index
    %c0_16 = arith.constant 0 : index
    %26 = vector.load %arg2[%c3, %c0_15, %c0_16] : memref<4x128x128xf32, #tpu.memory_space<vmem>>, vector<1x128x128xf32>
    %27 = vector.shape_cast %26 : vector<1x128x128xf32> to vector<128x128xf32>
    %cst_17 = arith.constant dense<0.000000e+00> : vector<8x128xf32>
    %28 = tpu.matmul %25, %27, %cst_17 {dimension_numbers = #tpu.dot_dimension_numbers<[1], [0], [0], [1], [0, 0, 1, 1], [], []>} : vector<8x128xf32>, vector<128x128xf32>, vector<8x128xf32> -> vector<8x128xf32>
    %29 = vector.extract_strided_slice %0 {offsets = [3, 0], sizes = [1, 128], strides = [1, 1]} : vector<4x128xf32> to vector<1x128xf32>
    %30 = vector.broadcast %29 : vector<1x128xf32> to vector<8x128xf32>
    %31 = arith.addf %28, %30 : vector<8x128xf32>
    %c0_18 = arith.constant 0 : index
    %c0_19 = arith.constant 0 : index
    %32 = vector.load %arg4[%c0_18, %c0_19] : memref<8x128xf32, #tpu.memory_space<vmem>>, vector<8x128xf32>
    tpu.vector_store %arg4[%c0_18, %c0_19], %31 {strides = array<i32>} : memref<8x128xf32, #tpu.memory_space<vmem>>, vector<8x128xf32>,
    return
  }
  func.func @transform_0(%arg0: i32) -> (i32, i32) {
    %c0_i32 = arith.constant 0 : i32
    %c0_i32_0 = arith.constant 0 : i32
    return %arg0, %c0_i32 : i32, i32
  }
  func.func @transform_1(%arg0: i32) -> (i32, i32, i32) {
    %c0_i32 = arith.constant 0 : i32
    %c0_i32_0 = arith.constant 0 : i32
    %c0_i32_1 = arith.constant 0 : i32
    %c0_i32_2 = arith.constant 0 : i32
    return %c0_i32, %c0_i32_0, %c0_i32_1 : i32, i32, i32
  }
  func.func @transform_2(%arg0: i32) -> (i32, i32) {
    %c0_i32 = arith.constant 0 : i32
    %c0_i32_0 = arith.constant 0 : i32
    %c0_i32_1 = arith.constant 0 : i32
    return %c0_i32, %c0_i32_0 : i32, i32
  }
  func.func @transform_3(%arg0: i32) -> (i32, i32) {
    %c0_i32 = arith.constant 0 : i32
    %c0_i32_0 = arith.constant 0 : i32
    return %arg0, %c0_i32 : i32, i32
  }
}

</mosaic_0001>

<bundles_post_ra>
// kernel: tpu_custom_call.1
= control target key start
LH: loop header
LB: loop body
LE: loop exit
PB: predicated region body
PF: predicated region fallthrough
CT: control target
= control target key end

     0   :  { %8 = vsyncpa [#allocation3], 0  ;;  %s936_s0 = inlined_call_operand.hbm [shape: f32[8,128], index: 0, kind: input, shape index: {}]   ;;  %s937_s1 = inlined_call_operand.hbm [shape: f32[4,128,128], index: 1, kind: input, shape index: {}]   ;;  %s938_s2 = inlined_call_operand.vmem [shape: f32[4,128], index: 2, kind: input, shape index: {}]   ;;  %s939_s3 = inlined_call_operand.hbm [shape: f32[8,128], index: 3, kind: output, shape index: {}]  }
   0x1   :  { %9 = vsyncpa [#allocation6], 0 }
   0x2   :  { %10 = vsyncpa [#allocation4], 0  ;;  %s810_s12 = smov [#allocation2]   ;;  %s811_s14 = smov [#allocation5]  }
   0x3   :  { %s17_s13 = sshll.u32 %s810_s12, 4  ;;  %s26_s15 = sshll.u32 %s811_s14, 4  ;;  %s18_s13 = int_to_ptr.vmem [resolvable:$true] %s17_s13  ;;  %s838_s15 = int_to_ptr.vmem [resolvable:$true] %s26_s15 }
   0x4   :  { %s738_s18 = scalar_lea.hbm %s936_s0, 128 }
   0x5   :  { %p739_p0 = scmp.ne.s32.totalorder %s936_s0, %s738_s18  ;;  %p742_p1 = scmp.lt.u32.totalorder %s738_s18, %s936_s0 }
   0x7   :  { %p744_p2 = pnand %p742_p1, %p739_p0 }
   0x9   :  { %747 = shalt.err (!%p744_p2)
}
   0xa   :  { %s748_s23 = scalar_lea.vmem %s18_s13, 128  ;;  %p753_p4 = scmp.lt.s32.totalorder %s18_s13, %s18_s13 }
   0xb   :  { %p749_p3 = scmp.ne.s32.totalorder %s18_s13, %s748_s23  ;;  %p754_p5 = scmp.lt.s32.totalorder %s748_s23, %s748_s23 }
   0xd   :  { %p755_p6 = por %p754_p5, %p753_p4 }
   0xf   :  { %p756_p7 = pnand %p755_p6, %p749_p3 }
  0x11   :  { %759 = shalt.err (!%p756_p7)
}
  0x12   :  { %20 = dma.hbm_to_vmem [thread:$0]  %s936_s0, 128, %s18_s13, [#allocation3]  }
  0x13   :  { %s760_s28 = scalar_lea.hbm %s937_s1, 8192 }
  0x14   :  { %p761_p8 = scmp.ne.s32.totalorder %s937_s1, %s760_s28  ;;  %p764_p9 = scmp.lt.u32.totalorder %s760_s28, %s937_s1 }
  0x16   :  { %p766_p10 = pnand %p764_p9, %p761_p8 }
  0x18   :  { %769 = shalt.err (!%p766_p10)
}
  0x19   :  { %s770_s6 = scalar_lea.vmem %s838_s15, 8192  ;;  %p775_p12 = scmp.lt.s32.totalorder %s838_s15, %s838_s15 }
  0x1a   :  { %p771_p11 = scmp.ne.s32.totalorder %s838_s15, %s770_s6  ;;  %p776_p13 = scmp.lt.s32.totalorder %s770_s6, %s770_s6 }
  0x1c   :  { %p777_p0 = por %p776_p13, %p775_p12 }
  0x1e   :  { %p778_p1 = pnand %p777_p0, %p771_p11 }
  0x20   :  { %781 = shalt.err (!%p778_p1)
}
  0x21   :  { %s812_s0 = smov 128   ;;  %s813_s7 = smov 8  }
  0x22   :  { %32 = dma.hbm_to_vmem [thread:$0]  %s937_s1, 8192, %s838_s15, [#allocation6], %s812_s0, %s812_s0, %s813_s7  }
  0x23   :  { %804 = dma.done.wait [#allocation3], 128  }
  0x24   :  { %805 = vsyncadd [#allocation3], 4294967168 }
  0x25   :  { %806 = dma.done.wait [#allocation6], 8192  }
  0x26   :  { %807 = vsyncadd [#allocation6], 4294959104  ;;  %v814_v0 = vmov 0.0|0.0   ;;  %vm815_vm0 = vmmov 0   ;;  %v816_v1 = vmov 0.0   ;;  %v43_v2 = vld [vmem:[#allocation5] sm:$0xff] }
  0x27   :  { %634 = vmatprep.subr.bf16.mxu0 %v814_v0  ;;  %526 = vmatprep.mubr.msk.f32.mxu0 %vm815_vm0, %v816_v1  ;;  %v44_v3 = vld [vmem:[#allocation5 + $0x8] sm:$0xff]  ;;  %v45_v4 = vld [vmem:[#allocation5 + $0x10] sm:$0xff]  ;;  %v46_v6 = vld [vmem:[#allocation5 + $0x18] sm:$0xff] }
  0x28   :  { %658 = vmatprep.subr.bf16.mxu1 %v814_v0  ;;  %561 = vmatprep.mubr.msk.f32.mxu1 %vm815_vm0, %v816_v1  ;;  %v635_v5 = vpack.c.bf16 %v44_v3, %v43_v2  ;;  %v638_v7 = vpack.c.bf16 %v46_v6, %v45_v4  ;;  %v47_v8 = vld [vmem:[#allocation5 + $0x20] sm:$0xff]  ;;  %v48_v9 = vld [vmem:[#allocation5 + $0x28] sm:$0xff]  ;;  %v137_v12 = vld [vmem:[#allocation5 + $0x90] sm:$0xff] }
  0x29   :  { %v135_v10 = vld [vmem:[#allocation5 + $0x80] sm:$0xff]  ;;  %v136_v11 = vld [vmem:[#allocation5 + $0x88] sm:$0xff]  ;;  %v138_v13 = vld [vmem:[#allocation5 + $0x98] sm:$0xff]  ;;  %v641_v14 = vpack.c.bf16 %v48_v9, %v47_v8 }
  0x2a   :  { %636 = vmatpush3.bf16.msra.mxu0 %v635_v5  ;;  %v659_v15 = vpack.c.bf16 %v136_v11, %v135_v10  ;;  %v49_v16 = vld [vmem:[#allocation5 + $0x30] sm:$0xff]  ;;  %v50_v17 = vld [vmem:[#allocation5 + $0x38] sm:$0xff]  ;;  %v662_v18 = vpack.c.bf16 %v138_v13, %v137_v12  ;;  %v139_v19 = vld [vmem:[#allocation5 + $0xa0] sm:$0xff]  ;;  %v59_v10 = vlaneseq }
  0x2b   :  { %637 = vmatprep.subr.bf16.mxu0 %v814_v0  ;;  %v140_v20 = vld [vmem:[#allocation5 + $0xa8] sm:$0xff]  ;;  %v644_v21 = vpack.c.bf16 %v50_v17, %v49_v16  ;;  %v51_v22 = vld [vmem:[#allocation5 + $0x40] sm:$0xff]  ;;  %v141_v25 = vld [vmem:[#allocation5 + $0xb0] sm:$0xff] }
  0x2c   :  { %660 = vmatpush3.bf16.msra.mxu1 %v659_v15  ;;  %v52_v23 = vld [vmem:[#allocation5 + $0x48] sm:$0xff]  ;;  %v665_v24 = vpack.c.bf16 %v140_v20, %v139_v19  ;;  %v142_v26 = vld [vmem:[#allocation5 + $0xb8] sm:$0xff]  ;;  %v53_v28 = vld [vmem:[#allocation5 + $0x50] sm:$0xff]  ;;  %v900_v11 = vshrl.u32 %v59_v10, 7 }
  0x2d   :  { %661 = vmatprep.subr.bf16.mxu1 %v814_v0  ;;  %v647_v27 = vpack.c.bf16 %v52_v23, %v51_v22  ;;  %v54_v29 = vld [vmem:[#allocation5 + $0x58] sm:$0xff]  ;;  %v668_v30 = vpack.c.bf16 %v142_v26, %v141_v25  ;;  %v143_v31 = vld [vmem:[#allocation5 + $0xc0] sm:$0xff]  ;;  %v144_v32 = vld [vmem:[#allocation5 + $0xc8] sm:$0xff] }
  0x2e   :  { %639 = vmatpush3.bf16.msra.mxu0 %v638_v7  ;;  %v650_v33 = vpack.c.bf16 %v54_v29, %v53_v28  ;;  %v55_v34 = vld [vmem:[#allocation5 + $0x60] sm:$0xff]  ;;  %v56_v35 = vld [vmem:[#allocation5 + $0x68] sm:$0xff]  ;;  %v671_v36 = vpack.c.bf16 %v144_v32, %v143_v31  ;;  %v145_v37 = vld [vmem:[#allocation5 + $0xd0] sm:$0xff]  ;;  %v61_v12 = vsub.s32 0, %v900_v11 }
  0x2f   :  { %640 = vmatprep.subr.bf16.mxu0 %v814_v0  ;;  %v146_v38 = vld [vmem:[#allocation5 + $0xd8] sm:$0xff]  ;;  %v653_v39 = vpack.c.bf16 %v56_v35, %v55_v34  ;;  %v57_v40 = vld [vmem:[#allocation5 + $0x70] sm:$0xff]  ;;  %v147_v43 = vld [vmem:[#allocation5 + $0xe0] sm:$0xff] }
  0x30   :  { %663 = vmatpush3.bf16.msra.mxu1 %v662_v18  ;;  %v58_v41 = vld [vmem:[#allocation5 + $0x78] sm:$0xff]  ;;  %v674_v42 = vpack.c.bf16 %v146_v38, %v145_v37  ;;  %v148_v44 = vld [vmem:[#allocation5 + $0xe8] sm:$0xff]  ;;  %v149_v48 = vld [vmem:[#allocation5 + $0xf0] sm:$0xff] }
  0x31   :  { %664 = vmatprep.subr.bf16.mxu1 %v814_v0  ;;  %v656_v45 = vpack.c.bf16 %v58_v41, %v57_v40  ;;  %v677_v46 = vpack.c.bf16 %v148_v44, %v147_v43  ;;  %v42_v47 = vld [vmem:[#allocation2] sm:$0xff]  ;;  %v227_v51 = vld [vmem:[#allocation5 + $0x100] sm:$0xff]  ;;  %v228_v52 = vld [vmem:[#allocation5 + $0x108] sm:$0xff] }
  0x32   :  { %642 = vmatpush3.bf16.msra.mxu0 %v641_v14  ;;  %v150_v49 = vld [vmem:[#allocation5 + $0xf8] sm:$0xff]  ;;  %v229_v53 = vld [vmem:[#allocation5 + $0x110] sm:$0xff]  ;;  %v683_v54 = vpack.c.bf16 %v228_v52, %v227_v51  ;;  %v231_v57 = vld [vmem:[#allocation5 + $0x120] sm:$0xff]  ;;  %v245_v51 = vsub.s32 2, %v900_v11 }
  0x33   :  { %643 = vmatprep.subr.bf16.mxu0 %v814_v0  ;;  %v680_v50 = vpack.c.bf16 %v150_v49, %v149_v48  ;;  %v230_v55 = vld [vmem:[#allocation5 + $0x118] sm:$0xff]  ;;  %v232_v58 = vld [vmem:[#allocation5 + $0x128] sm:$0xff]  ;;  %v233_v60 = vld [vmem:[#allocation5 + $0x130] sm:$0xff] }
  0x34   :  { %666 = vmatpush3.bf16.msra.mxu1 %v665_v24  ;;  %v686_v56 = vpack.c.bf16 %v230_v55, %v229_v53  ;;  %v689_v59 = vpack.c.bf16 %v232_v58, %v231_v57  ;;  %v234_v61 = vld [vmem:[#allocation5 + $0x138] sm:$0xff]  ;;  %v235_v63 = vld [vmem:[#allocation5 + $0x140] sm:$0xff]  ;;  %v236_v2 = vld [vmem:[#allocation5 + $0x148] sm:$0xff] }
  0x35   :  { %667 = vmatprep.subr.bf16.mxu1 %v814_v0  ;;  %v692_v62 = vpack.c.bf16 %v234_v61, %v233_v60  ;;  %v695_v3 = vpack.c.bf16 %v236_v2, %v235_v63  ;;  %v237_v4 = vld [vmem:[#allocation5 + $0x150] sm:$0xff]  ;;  %v238_v5 = vld [vmem:[#allocation5 + $0x158] sm:$0xff]  ;;  %v239_v7 = vld [vmem:[#allocation5 + $0x160] sm:$0xff] }
  0x36   :  { %645 = vmatpush3.bf16.msra.mxu0 %v644_v21  ;;  %v698_v6 = vpack.c.bf16 %v238_v5, %v237_v4  ;;  %v240_v8 = vld [vmem:[#allocation5 + $0x168] sm:$0xff]  ;;  %v906_v13 = vld [vmem:[%s938_s2] sm:$0xf]  ;;  %v241_v19 = vld [vmem:[#allocation5 + $0x170] sm:$0xff]  ;;  %s817_s2 = smov [#allocation7]  }
  0x37   :  { %646 = vmatprep.subr.bf16.mxu0 %v814_v0  ;;  %v701_v9 = vpack.c.bf16 %v240_v8, %v239_v7  ;;  %v62_v14 = vrot.slane %v906_v13, %v61_v12  ;;  %v242_v20 = vld [vmem:[#allocation5 + $0x178] sm:$0xff]  ;;  %v319_v22 = vld [vmem:[#allocation5 + $0x180] sm:$0xff]  ;;  %v320_v23 = vld [vmem:[#allocation5 + $0x188] sm:$0xff]  ;;  %v246_v52 = vrot.slane %v906_v13, %v245_v51  ;;  %s416_s11 = sshll.u32 %s817_s2, 4  ;;  %s417_s11 = int_to_ptr.vmem [resolvable:$true] %s416_s11 }
  0x38   :  { %669 = vmatpush3.bf16.msra.mxu1 %v668_v30  ;;  %v704_v21 = vpack.c.bf16 %v242_v20, %v241_v19  ;;  %v321_v24 = vld [vmem:[#allocation5 + $0x190] sm:$0xff]  ;;  %v707_v25 = vpack.c.bf16 %v320_v23, %v319_v22  ;;  %v322_v26 = vld [vmem:[#allocation5 + $0x198] sm:$0xff]  ;;  %v323_v28 = vld [vmem:[#allocation5 + $0x1a0] sm:$0xff]  ;;  %s782_s12 = scalar_lea.vmem %s417_s11, 128  ;;  %p787_p3 = scmp.lt.s32.totalorder %s417_s11, %s417_s11 }
  0x39   :  { %670 = vmatprep.subr.bf16.mxu1 %v814_v0  ;;  %v324_v29 = vld [vmem:[#allocation5 + $0x1a8] sm:$0xff]  ;;  %v326_v31 = vld [vmem:[#allocation5 + $0x1b8] sm:$0xff]  ;;  %v333_v48 = vld [vmem:[#allocation5 + $0x1f0] sm:$0xff]  ;;  %p783_p2 = scmp.ne.s32.totalorder %s417_s11, %s782_s12  ;;  %p788_p4 = scmp.lt.s32.totalorder %s782_s12, %s782_s12 }
  0x3a   :  { %648 = vmatpush3.bf16.msra.mxu0 %v647_v27  ;;  %v710_v27 = vpack.c.bf16 %v322_v26, %v321_v24  ;;  %v713_v30 = vpack.c.bf16 %v324_v29, %v323_v28  ;;  %v328_v34 = vld [vmem:[#allocation5 + $0x1c8] sm:$0xff]  ;;  %v330_v37 = vld [vmem:[#allocation5 + $0x1d8] sm:$0xff] }
  0x3b   :  { %649 = vmatprep.subr.bf16.mxu0 %v814_v0  ;;  %v332_v40 = vld [vmem:[#allocation5 + $0x1e8] sm:$0xff]  ;;  %v334_v49 = vld [vmem:[#allocation5 + $0x1f8] sm:$0xff]  ;;  %p789_p5 = por %p788_p4, %p787_p3 }
  0x3c   :  { %672 = vmatpush3.bf16.msra.mxu1 %v671_v36  ;;  %v329_v36 = vld [vmem:[#allocation5 + $0x1d0] sm:$0xff] }
  0x3d   :  { %673 = vmatprep.subr.bf16.mxu1 %v814_v0  ;;  %v722_v38 = vpack.c.bf16 %v330_v37, %v329_v36  ;;  %p790_p6 = pnand %p789_p5, %p783_p2 }
  0x3e   :  { %651 = vmatpush3.bf16.msra.mxu0 %v650_v33  ;;  %v327_v33 = vld [vmem:[#allocation5 + $0x1c0] sm:$0xff] }
  0x3f   :  { %652 = vmatprep.subr.bf16.mxu0 %v814_v0  ;;  %v719_v35 = vpack.c.bf16 %v328_v34, %v327_v33 }
  0x40   :  { %675 = vmatpush3.bf16.msra.mxu1 %v674_v42  ;;  %v153_v42 = vsub.s32 1, %v900_v11 }
  0x41   :  { %676 = vmatprep.subr.bf16.mxu1 %v814_v0 }
  0x42   :  { %654 = vmatpush3.bf16.msra.mxu0 %v653_v39  ;;  %v331_v39 = vld [vmem:[#allocation5 + $0x1e0] sm:$0xff]  ;;  %v154_v43 = vrot.slane %v906_v13, %v153_v42 }
  0x43   :  { %655 = vmatprep.subr.bf16.mxu0 %v814_v0  ;;  %v725_v41 = vpack.c.bf16 %v332_v40, %v331_v39 }
  0x44   :  { %678 = vmatpush3.bf16.msra.mxu1 %v677_v46 }
  0x45   :  { %679 = vmatprep.subr.bf16.mxu1 %v814_v0 }
  0x46   :  { %657 = vmatpush3.bf16.msra.mxu0 %v656_v45 }
  0x47   :  { %682 = vmatprep.subr.bf16.mxu0 %v814_v0 }
  0x48   :  { %681 = vmatpush3.bf16.msra.mxu1 %v680_v50  ;;  %v728_v50 = vpack.c.bf16 %v334_v49, %v333_v48 }
  0x49   :  { %527 = vmatmul.mubr.f32.vlgmr.msra.gmra.mrb[0].mxu0 %v42_v47  ;;  %706 = vmatprep.subr.bf16.mxu1 %v814_v0 }
  0x4a   :  { %596 = vmatprep.mubr.msk.f32.mxu0 %vm815_vm0, %v816_v1  ;;  %684 = vmatpush3.bf16.msra.mxu0 %v683_v54 }
  0x4b   :  { %685 = vmatprep.subr.bf16.mxu0 %v814_v0 }
  0x4e   :  { %687 = vmatpush3.bf16.msra.mxu0 %v686_v56  ;;  %v337_v56 = vsub.s32 3, %v900_v11 }
  0x4f   :  { %688 = vmatprep.subr.bf16.mxu0 %v814_v0 }
  0x50   :  { %v338_v57 = vrot.slane %v906_v13, %v337_v56 }
  0x52   :  { %690 = vmatpush3.bf16.msra.mxu0 %v689_v59 }
  0x53   :  { %691 = vmatprep.subr.bf16.mxu0 %v814_v0 }
  0x56   :  { %693 = vmatpush3.bf16.msra.mxu0 %v692_v62 }
  0x57   :  { %694 = vmatprep.subr.bf16.mxu0 %v814_v0 }
  0x5a   :  { %696 = vmatpush3.bf16.msra.mxu0 %v695_v3 }
  0x5b   :  { %697 = vmatprep.subr.bf16.mxu0 %v814_v0 }
  0x5e   :  { %699 = vmatpush3.bf16.msra.mxu0 %v698_v6 }
  0x5f   :  { %700 = vmatprep.subr.bf16.mxu0 %v814_v0 }
  0x62   :  { %702 = vmatpush3.bf16.msra.mxu0 %v701_v9 }
  0x63   :  { %703 = vmatprep.subr.bf16.mxu0 %v814_v0 }
  0x66   :  { %705 = vmatpush3.bf16.msra.mxu0 %v704_v21 }
 0x11c   :  { %v129_v15 = vpop.f32.mrb[0].mxu0 }
 0x11d   :  { %v130_v16 = vadd.f32 %v129_v15, %v62_v14  ;;  %v528_v17 = vpop.f32.mrb[1].mxu0 }
 0x11f   :  { %v133_v18 = vmax.f32 %v130_v16, 0.0 }
 0x121   :  { %562 = vmatmul.mubr.f32.vlgmr.msra.gmra.mrb[0].mxu1 %v133_v18 }
 0x122   :  { %631 = vmatprep.mubr.msk.f32.mxu1 %vm815_vm0, %v816_v1  ;;  %708 = vmatpush3.bf16.msra.mxu1 %v707_v25  ;;  %v325_v1 = vld [vmem:[#allocation5 + $0x1b0] sm:$0xff] }
 0x123   :  { %709 = vmatprep.subr.bf16.mxu1 %v814_v0  ;;  %v716_v32 = vpack.c.bf16 %v326_v31, %v325_v1 }
 0x126   :  { %711 = vmatpush3.bf16.msra.mxu1 %v710_v27 }
 0x127   :  { %712 = vmatprep.subr.bf16.mxu1 %v814_v0 }
 0x12a   :  { %714 = vmatpush3.bf16.msra.mxu1 %v713_v30 }
 0x12b   :  { %715 = vmatprep.subr.bf16.mxu1 %v814_v0 }
 0x12e   :  { %717 = vmatpush3.bf16.msra.mxu1 %v716_v32 }
 0x12f   :  { %718 = vmatprep.subr.bf16.mxu1 %v814_v0 }
 0x132   :  { %720 = vmatpush3.bf16.msra.mxu1 %v719_v35 }
 0x133   :  { %721 = vmatprep.subr.bf16.mxu1 %v814_v0 }
 0x136   :  { %723 = vmatpush3.bf16.msra.mxu1 %v722_v38 }
 0x137   :  { %724 = vmatprep.subr.bf16.mxu1 %v814_v0 }
 0x13a   :  { %726 = vmatpush3.bf16.msra.mxu1 %v725_v41 }
 0x13b   :  { %727 = vmatprep.subr.bf16.mxu1 %v814_v0 }
 0x13e   :  { %729 = vmatpush3.bf16.msra.mxu1 %v728_v50 }
 0x1f4   :  { %v221_v44 = vpop.f32.mrb[0].mxu1 }
 0x1f5   :  { %v222_v45 = vadd.f32 %v221_v44, %v154_v43  ;;  %v563_v46 = vpop.f32.mrb[1].mxu1 }
 0x1f7   :  { %v225_v47 = vmax.f32 %v222_v45, 0.0 }
 0x1f9   :  { %597 = vmatmul.mubr.f32.vlgmr.msra.gmra.mrb[2].mxu0 %v225_v47 }
 0x2cc   :  { %v313_v53 = vpop.f32.mrb[2].mxu0 }
 0x2cd   :  { %v314_v54 = vadd.f32 %v313_v53, %v246_v52  ;;  %v598_v0 = vpop.f32.mrb[3].mxu0 }
 0x2cf   :  { %v317_v55 = vmax.f32 %v314_v54, 0.0 }
 0x2d1   :  { %632 = vmatmul.mubr.f32.vlgmr.msra.gmra.mrb[2].mxu1 %v317_v55 }
 0x3a4   :  { %v405_v58 = vpop.f32.mrb[2].mxu1 }
 0x3a5   :  { %v406_v59 = vadd.f32 %v405_v58, %v338_v57  ;;  %v633_v60 = vpop.f32.mrb[3].mxu1 }
 0x3a7   :  { %409 = vst [vmem:[#allocation7] sm:$0xff] %v406_v59 }
 0x3a8   :  { %793 = shalt.err (!%p790_p6)
}
 0x3a9   :  { %s794_s15 = scalar_lea.hbm %s939_s3, 128 }
 0x3aa   :  { %p795_p7 = scmp.ne.s32.totalorder %s939_s3, %s794_s15  ;;  %p798_p8 = scmp.lt.u32.totalorder %s794_s15, %s939_s3 }
 0x3ac   :  { %p800_p9 = pnand %p798_p8, %p795_p7 }
 0x3ae   :  { %803 = shalt.err (!%p800_p9)
}
 0x3af   :  { %419 = dma.vmem_to_hbm [thread:$0]  %s417_s11, 128, %s939_s3, [#allocation4]  }
 0x3b0   :  { %808 = dma.done.wait [#allocation4], 128  }
 0x3b1   :  { %809 = vsyncadd [#allocation4], 4294967168 }
 0x3b2   :  { %423 = vsyncpa [#allocation3], 1 }
 0x3b3   :  { %424 = vsyncpa [#allocation6], 1 }
 0x3b4   :  { %425 = vsyncpa [#allocation4], 1 }

</bundles_post_ra>
